<compile_context>
chip_gen: v5e
topology: v5e:2x2
jax: 0.10.0
libtpu: 0.0.40
codegen_flags: <defaults>
</compile_context>

<pallas_src>
import math

import jax
import jax.numpy as jnp
from jax.experimental import pallas as pl
from jax.experimental.pallas import tpu as pltpu


def _round_up(x, m):
    return ((x + m - 1) // m) * m


def mlp_kernel(x_ref, w1_ref, b1_ref, w2_ref, b2_ref, w3_ref, b3_ref, o_ref):
    # Fused forward for features = [D_in, H1, H2, D_out]:
    #   hidden: Linear -> ReLU -> Dropout(identity), twice
    #   output: Linear
    # x arrives as f32; cast to bf16 on the VPU right before the first MXU op
    # (nothing here is VALU-bound, so the in-kernel cast is free and saves a
    # full wrapper-side HBM pass over x).
    x = x_ref[...].astype(jnp.bfloat16)
    h = jnp.dot(x, w1_ref[...], preferred_element_type=jnp.float32)
    h = jnp.maximum(h + b1_ref[...], 0.0)          # ReLU_1 (+ Dropout_1 = id)

    h = jnp.dot(h.astype(jnp.bfloat16), w2_ref[...],
                preferred_element_type=jnp.float32)
    h = jnp.maximum(h + b2_ref[...], 0.0)          # ReLU_2 (+ Dropout_2 = id)

    out = jnp.dot(h.astype(jnp.bfloat16), w3_ref[...],
                  preferred_element_type=jnp.float32)
    o_ref[...] = (out + b3_ref[...]).astype(o_ref.dtype)


def prepare_params(params):
    """One-time weight prep, hoisted out of the per-call path.

    Weights stored pre-transposed as (in, out) bf16; biases as (1, out) f32.
    """
    return tuple(
        (w.astype(jnp.bfloat16), b.reshape(1, -1).astype(jnp.float32))
        for (w, b) in params
    )


def _pick_batch_tiling(B, tile_b):
    # Number of batch tiles: enough to keep tiles <= tile_b, and (for v7x's
    # 2 TensorCores) at least 2 balanced tiles once the batch is big enough
    # that the ~0.35us/step overhead no longer dominates.
    num_tiles = max(1, math.ceil(B / tile_b))
    if B >= 256 and num_tiles == 1:
        num_tiles = 2
    # Tile chosen to divide B as tightly as possible (avoids ~2x padding
    # blowup when B is just above a tile multiple); multiple of 16 for bf16
    # sublane packing of the in-kernel cast.
    tile_b_eff = _round_up(math.ceil(B / num_tiles), 16)
    Bp = tile_b_eff * num_tiles
    return tile_b_eff, Bp


def net_forward(x, prepped_params, *, tile_b=1024):
    """Fused MLP forward.  x: (B, D_in) float32.  Returns (B, D_out) f32.

    Eval-mode semantics (Dropout = identity).
    """
    (w1, b1), (w2, b2), (w3, b3) = prepped_params
    B, d_in = x.shape
    d_out = w3.shape[1]

    tile_b_eff, Bp = _pick_batch_tiling(B, tile_b)
    if Bp != B:
        x = jnp.pad(x, ((0, Bp - B), (0, 0)))

    grid = (Bp // tile_b_eff,)

    def act_spec(d):
        return pl.BlockSpec((tile_b_eff, d), lambda i: (i, 0))

    def full_spec(shape):
        # Constant block index -> block stays resident in VMEM across steps.
        return pl.BlockSpec(shape, lambda i: (0,) * len(shape))

    out = pl.pallas_call(
        mlp_kernel,
        out_shape=jax.ShapeDtypeStruct((Bp, d_out), jnp.float32),
        grid_spec=pl.GridSpec(
            grid=grid,
            in_specs=[
                act_spec(d_in),
                full_spec(w1.shape), full_spec(b1.shape),
                full_spec(w2.shape), full_spec(b2.shape),
                full_spec(w3.shape), full_spec(b3.shape),
            ],
            out_specs=act_spec(d_out),
        ),
        compiler_params=pltpu.CompilerParams(
            dimension_semantics=("parallel",)),
    )(x, w1, b1, w2, b2, w3, b3)

    if Bp != B:
        out = out[:B]       # strip batch padding only (no lane slice)
    return out


def init_params(key, features):
    """Deterministic init.  Weights stored as (in, out); biases as (1, out)."""
    params = []
    for i in range(len(features) - 1):
        key, kw, kb = jax.random.split(key, 3)
        fan_in, fan_out = features[i], features[i + 1]
        bound = 1.0 / (fan_in ** 0.5)  # matches nn.Linear default init range
        w = jax.random.uniform(kw, (fan_in, fan_out), jnp.float32, -bound, bound)
        b = jax.random.uniform(kb, (1, fan_out), jnp.float32, -bound, bound)
        params.append((w, b))
    return params


if __name__ == "__main__":
    # Net(features=[32, 64, 64, 16], dropout_rate=0.5), eval mode.
    features = [32, 64, 64, 16]
    batch = 8

    key = jax.random.PRNGKey(0)
    key, kx = jax.random.split(key)
    x = jax.random.normal(kx, (batch, features[0]), jnp.float32)
    params = init_params(key, features)
    prepped = prepare_params(params)   # one-time weight prep (hoisted)

    out = net_forward(x, prepped)
    out = jax.block_until_ready(out)
    assert out.shape == (batch, features[-1])

    # Reference in plain JAX with the same bf16 quantization of x/weights and
    # f32 accumulation (matches kernel numerics closely).
    (w1, b1), (w2, b2), (w3, b3) = params

    def q(a):
        return a.astype(jnp.bfloat16).astype(jnp.float32)

    h = jnp.maximum(q(x) @ q(w1) + b1, 0.0)
    h = jnp.maximum(q(h) @ q(w2) + b2, 0.0)
    ref = q(h) @ q(w3) + b3

    assert jnp.allclose(out, ref, atol=1e-3, rtol=1e-3), (
        float(jnp.max(jnp.abs(out - ref))))

    print("KERNEL_OK")
</pallas_src>

<mosaic_0001>
module attributes {stable_mosaic.version = 11 : i64} {
  func.func @mlp_kernel(%arg0: i32, %arg1: memref<16x32xf32, #tpu.memory_space<vmem>>, %arg2: memref<32x64xbf16, #tpu.memory_space<vmem>>, %arg3: memref<1x64xf32, #tpu.memory_space<vmem>>, %arg4: memref<64x64xbf16, #tpu.memory_space<vmem>>, %arg5: memref<1x64xf32, #tpu.memory_space<vmem>>, %arg6: memref<64x16xbf16, #tpu.memory_space<vmem>>, %arg7: memref<1x16xf32, #tpu.memory_space<vmem>>, %arg8: memref<16x16xf32, #tpu.memory_space<vmem>>) attributes {dimension_semantics = [#tpu.dimension_semantics<parallel>], iteration_bounds = array<i64: 1>, scalar_prefetch = 0 : i64, scratch_operands = 0 : i64, tpu.core_type = #tpu.core_type<tc>, window_params = [{transform_indices = @transform_0, window_bounds = array<i64: 16, 32>}, {pipeline_mode = #tpu.pipeline_mode<synchronous>, transform_indices = @transform_1, window_bounds = array<i64: 32, 64>}, {pipeline_mode = #tpu.pipeline_mode<synchronous>, transform_indices = @transform_2, window_bounds = array<i64: 1, 64>}, {pipeline_mode = #tpu.pipeline_mode<synchronous>, transform_indices = @transform_3, window_bounds = array<i64: 64, 64>}, {pipeline_mode = #tpu.pipeline_mode<synchronous>, transform_indices = @transform_4, window_bounds = array<i64: 1, 64>}, {pipeline_mode = #tpu.pipeline_mode<synchronous>, transform_indices = @transform_5, window_bounds = array<i64: 64, 16>}, {pipeline_mode = #tpu.pipeline_mode<synchronous>, transform_indices = @transform_6, window_bounds = array<i64: 1, 16>}, {transform_indices = @transform_7, window_bounds = array<i64: 16, 16>}]} {
    %c0 = arith.constant 0 : index
    %c0_0 = arith.constant 0 : index
    %0 = vector.load %arg1[%c0, %c0_0] : memref<16x32xf32, #tpu.memory_space<vmem>>, vector<16x32xf32>
    %1 = arith.truncf %0 : vector<16x32xf32> to vector<16x32xbf16>
    %c0_1 = arith.constant 0 : index
    %c0_2 = arith.constant 0 : index
    %2 = vector.load %arg2[%c0_1, %c0_2] : memref<32x64xbf16, #tpu.memory_space<vmem>>, vector<32x64xbf16>
    %cst = arith.constant dense<0.000000e+00> : vector<16x64xf32>
    %3 = tpu.matmul %1, %2, %cst {dimension_numbers = #tpu.dot_dimension_numbers<[1], [0], [0], [1], [0, 0, 1, 1], [], []>} : vector<16x32xbf16>, vector<32x64xbf16>, vector<16x64xf32> -> vector<16x64xf32>
    %c0_3 = arith.constant 0 : index
    %c0_4 = arith.constant 0 : index
    %4 = vector.load %arg3[%c0_3, %c0_4] : memref<1x64xf32, #tpu.memory_space<vmem>>, vector<1x64xf32>
    %5 = vector.broadcast %4 : vector<1x64xf32> to vector<16x64xf32>
    %6 = arith.addf %3, %5 : vector<16x64xf32>
    %cst_5 = arith.constant 0.000000e+00 : f32
    %7 = vector.broadcast %cst_5 : f32 to vector<16x64xf32>
    %8 = arith.maximumf %6, %7 : vector<16x64xf32>
    %9 = arith.truncf %8 : vector<16x64xf32> to vector<16x64xbf16>
    %c0_6 = arith.constant 0 : index
    %c0_7 = arith.constant 0 : index
    %10 = vector.load %arg4[%c0_6, %c0_7] : memref<64x64xbf16, #tpu.memory_space<vmem>>, vector<64x64xbf16>
    %cst_8 = arith.constant dense<0.000000e+00> : vector<16x64xf32>
    %11 = tpu.matmul %9, %10, %cst_8 {dimension_numbers = #tpu.dot_dimension_numbers<[1], [0], [0], [1], [0, 0, 1, 1], [], []>} : vector<16x64xbf16>, vector<64x64xbf16>, vector<16x64xf32> -> vector<16x64xf32>
    %c0_9 = arith.constant 0 : index
    %c0_10 = arith.constant 0 : index
    %12 = vector.load %arg5[%c0_9, %c0_10] : memref<1x64xf32, #tpu.memory_space<vmem>>, vector<1x64xf32>
    %13 = vector.broadcast %12 : vector<1x64xf32> to vector<16x64xf32>
    %14 = arith.addf %11, %13 : vector<16x64xf32>
    %cst_11 = arith.constant 0.000000e+00 : f32
    %15 = vector.broadcast %cst_11 : f32 to vector<16x64xf32>
    %16 = arith.maximumf %14, %15 : vector<16x64xf32>
    %17 = arith.truncf %16 : vector<16x64xf32> to vector<16x64xbf16>
    %c0_12 = arith.constant 0 : index
    %c0_13 = arith.constant 0 : index
    %18 = vector.load %arg6[%c0_12, %c0_13] : memref<64x16xbf16, #tpu.memory_space<vmem>>, vector<64x16xbf16>
    %cst_14 = arith.constant dense<0.000000e+00> : vector<16x16xf32>
    %19 = tpu.matmul %17, %18, %cst_14 {dimension_numbers = #tpu.dot_dimension_numbers<[1], [0], [0], [1], [0, 0, 1, 1], [], []>} : vector<16x64xbf16>, vector<64x16xbf16>, vector<16x16xf32> -> vector<16x16xf32>
    %c0_15 = arith.constant 0 : index
    %c0_16 = arith.constant 0 : index
    %20 = vector.load %arg7[%c0_15, %c0_16] : memref<1x16xf32, #tpu.memory_space<vmem>>, vector<1x16xf32>
    %21 = vector.broadcast %20 : vector<1x16xf32> to vector<16x16xf32>
    %22 = arith.addf %19, %21 : vector<16x16xf32>
    %c0_17 = arith.constant 0 : index
    %c0_18 = arith.constant 0 : index
    %23 = vector.load %arg8[%c0_17, %c0_18] : memref<16x16xf32, #tpu.memory_space<vmem>>, vector<16x16xf32>
    tpu.vector_store %arg8[%c0_17, %c0_18], %22 {strides = array<i32>} : memref<16x16xf32, #tpu.memory_space<vmem>>, vector<16x16xf32>,
    return
  }
  func.func @transform_0(%arg0: i32) -> (i32, i32) {
    %c0_i32 = arith.constant 0 : i32
    %c0_i32_0 = arith.constant 0 : i32
    return %arg0, %c0_i32 : i32, i32
  }
  func.func @transform_1(%arg0: i32) -> (i32, i32) {
    %c0_i32 = arith.constant 0 : i32
    %c0_i32_0 = arith.constant 0 : i32
    %c0_i32_1 = arith.constant 0 : i32
    return %c0_i32, %c0_i32_0 : i32, i32
  }
  func.func @transform_2(%arg0: i32) -> (i32, i32) {
    %c0_i32 = arith.constant 0 : i32
    %c0_i32_0 = arith.constant 0 : i32
    %c0_i32_1 = arith.constant 0 : i32
    return %c0_i32, %c0_i32_0 : i32, i32
  }
  func.func @transform_3(%arg0: i32) -> (i32, i32) {
    %c0_i32 = arith.constant 0 : i32
    %c0_i32_0 = arith.constant 0 : i32
    %c0_i32_1 = arith.constant 0 : i32
    return %c0_i32, %c0_i32_0 : i32, i32
  }
  func.func @transform_4(%arg0: i32) -> (i32, i32) {
    %c0_i32 = arith.constant 0 : i32
    %c0_i32_0 = arith.constant 0 : i32
    %c0_i32_1 = arith.constant 0 : i32
    return %c0_i32, %c0_i32_0 : i32, i32
  }
  func.func @transform_5(%arg0: i32) -> (i32, i32) {
    %c0_i32 = arith.constant 0 : i32
    %c0_i32_0 = arith.constant 0 : i32
    %c0_i32_1 = arith.constant 0 : i32
    return %c0_i32, %c0_i32_0 : i32, i32
  }
  func.func @transform_6(%arg0: i32) -> (i32, i32) {
    %c0_i32 = arith.constant 0 : i32
    %c0_i32_0 = arith.constant 0 : i32
    %c0_i32_1 = arith.constant 0 : i32
    return %c0_i32, %c0_i32_0 : i32, i32
  }
  func.func @transform_7(%arg0: i32) -> (i32, i32) {
    %c0_i32 = arith.constant 0 : i32
    %c0_i32_0 = arith.constant 0 : i32
    return %arg0, %c0_i32 : i32, i32
  }
}

</mosaic_0001>

<bundles_post_ra>
// kernel: tpu_custom_call.1
= control target key start
LH: loop header
LB: loop body
LE: loop exit
PB: predicated region body
PF: predicated region fallthrough
CT: control target
= control target key end

     0   :  { %12 = vsyncpa [#allocation3], 0  ;;  %s475_s0 = inlined_call_operand.hbm [shape: f32[16,32], index: 0, kind: input, shape index: {}]   ;;  %s476_s1 = inlined_call_operand.hbm [shape: bf16[32,64], index: 1, kind: input, shape index: {}]   ;;  %s477_s2 = inlined_call_operand.vmem [shape: f32[1,64], index: 2, kind: input, shape index: {}]   ;;  %s478_s3 = inlined_call_operand.vmem [shape: bf16[64,64], index: 3, kind: input, shape index: {}]   ;;  %s479_s4 = inlined_call_operand.vmem [shape: f32[1,64], index: 4, kind: input, shape index: {}]   ;;  %s480_s5 = inlined_call_operand.vmem [shape: bf16[64,16], index: 5, kind: input, shape index: {}]   ;;  %s481_s6 = inlined_call_operand.vmem [shape: f32[1,16], index: 6, kind: input, shape index: {}]   ;;  %s482_s7 = inlined_call_operand.hbm [shape: f32[16,16], index: 7, kind: output, shape index: {}]  }
   0x1   :  { %13 = vsyncpa [#allocation6], 0 }
   0x2   :  { %14 = vsyncpa [#allocation4], 0  ;;  %s19_s26 = sshll.u32 %s475_s0, 4  ;;  %s378_s27 = smov [#allocation2]   ;;  %s20_s26 = int_to_ptr.hbm [resolvable:$true] %s19_s26 }
   0x3   :  { %s21_s28 = sshll.u32 %s378_s27, 4  ;;  %s32_s8 = sshll.u32 %s476_s1, 4  ;;  %s22_s28 = int_to_ptr.vmem [resolvable:$true] %s21_s28  ;;  %s33_s8 = int_to_ptr.hbm [resolvable:$true] %s32_s8 }
   0x4   :  { %s379_s9 = smov 128   ;;  %s380_s10 = smov 8  }
   0x5   :  { %27 = dma.hbm_to_vmem [thread:$0]  %s20_s26, 256, %s22_s28, [#allocation3], %s379_s9, %s379_s9, %s380_s10  }
   0x6   :  { %s381_s11 = smov [#allocation5]   ;;  %s382_s13 = smov 64  }
   0x7   :  { %s34_s12 = sshll.u32 %s381_s11, 4  ;;  %s383_s0 = smov 4   ;;  %s35_s12 = int_to_ptr.vmem [resolvable:$true] %s34_s12 }
   0x8   :  { %40 = dma.hbm_to_vmem [thread:$0]  %s33_s8, 256, %s35_s12, [#allocation6], %s382_s13, %s382_s13, %s383_s0  }
   0x9   :  { %372 = dma.done.wait [#allocation3], 256  }
   0xa   :  { %373 = vsyncadd [#allocation3], 4294967040 }
   0xb   :  { %374 = dma.done.wait [#allocation6], 256  }
   0xc   :  { %375 = vsyncadd [#allocation6], 4294967040  ;;  %v281_v0 = vld [vmem:[#allocation5 + $0x8] sm:$0xff]  ;;  %v280_v1 = vld [vmem:[#allocation5] sm:$0xff]  ;;  %vm83_vm0 = vcmask 261120   ;;  %vm140_vm1 = vcmask 523264  }
   0xd   :  { %v60_v2 = vld [vmem:[#allocation2] sm:$0xff]  ;;  %93 = vmatpush.bf16.msra.mxu0 %v281_v0  ;;  %v61_v3 = vld [vmem:[#allocation2 + $0x8] sm:$0xff]  ;;  %v285_v5 = vld [vmem:[%s478_s3 + $0x18] sm:$0xff]  ;;  %vm214_vm2 = vcmask 130048   ;;  %s223_s0 = sshll.u32 %s482_s7, 4  ;;  %s224_s0 = int_to_ptr.hbm [resolvable:$true] %s223_s0 }
   0xe   :  { %v62_v4 = vpack.c.bf16 %v61_v3, %v60_v2  ;;  %148 = vmatpush.bf16.msra.mxu1 %v285_v5  ;;  %v284_v6 = vld [vmem:[%s478_s3 + $0x10] sm:$0xff]  ;;  %v283_v7 = vld [vmem:[%s478_s3 + $0x8] sm:$0xff]  ;;  %v282_v8 = vld [vmem:[%s478_s3] sm:$0xff] }
   0xf   :  { %v297_v10 = vld [vmem:[%s477_s2] ss:$0 sm:$0xff]  ;;  %v289_v17 = vld [vmem:[%s480_s5 + $0x18] sm:$0xff]  ;;  %v288_v18 = vld [vmem:[%s480_s5 + $0x10] sm:$0xff] }
  0x10   :  { %204 = vmatpush.bf16.msra.mxu2 %v289_v17  ;;  %v287_v19 = vld [vmem:[%s480_s5 + $0x8] sm:$0xff]  ;;  %v286_v20 = vld [vmem:[%s480_s5] sm:$0xff]  ;;  %s384_s5 = smov [#allocation7]  }
  0x11   :  { %94 = vmatpush.bf16.msra.mxu0 %v280_v1  ;;  %v298_v22 = vld [vmem:[%s479_s4] ss:$0 sm:$0xff]  ;;  %s221_s12 = sshll.u32 %s384_s5, 4  ;;  %s222_s12 = int_to_ptr.vmem [resolvable:$true] %s221_s12 }
  0x12   :  { %149 = vmatpush.bf16.msra.mxu1 %v284_v6  ;;  %v299_v29 = vld [vmem:[%s481_s6] ss:$0 sm:$0xff] }
  0x14   :  { %245 = vmatmul.msk.bf16.vlgmr.msra.gmra.mxu0 %vm83_vm0, %v62_v4  ;;  %205 = vmatpush.bf16.msra.mxu2 %v288_v18 }
  0x16   :  { %150 = vmatpush.bf16.msra.mxu1 %v283_v7 }
  0x18   :  { %206 = vmatpush.bf16.msra.mxu2 %v287_v19 }
  0x1a   :  { %151 = vmatpush.bf16.msra.mxu1 %v282_v8 }
  0x1c   :  { %207 = vmatpush.bf16.msra.mxu2 %v286_v20 }
  0x91   :  { %v96_v9 = vpop.f32.mrf.mxu0 }
  0x92   :  { %v97_v11 = vadd.f32 %v297_v10, %v96_v9 }
  0x94   :  { %v101_v14 = vmax.f32 %v97_v11, 0.0 }
  0x99   :  { %v98_v12 = vpop.f32.mrf.mxu0 }
  0x9a   :  { %v99_v13 = vadd.f32 %v297_v10, %v98_v12 }
  0x9c   :  { %v102_v15 = vmax.f32 %v99_v13, 0.0 }
  0x9e   :  { %v103_v16 = vpack.c.bf16 %v102_v15, %v101_v14 }
  0xa0   :  { %262 = vmatmul.msk.bf16.vlgmr.msra.gmra.mxu1 %vm140_vm1, %v103_v16 }
 0x11d   :  { %v153_v21 = vpop.f32.mrf.mxu1 }
 0x11e   :  { %v154_v23 = vadd.f32 %v298_v22, %v153_v21 }
 0x120   :  { %v158_v26 = vmax.f32 %v154_v23, 0.0 }
 0x125   :  { %v155_v24 = vpop.f32.mrf.mxu1 }
 0x126   :  { %v156_v25 = vadd.f32 %v298_v22, %v155_v24 }
 0x128   :  { %v159_v27 = vmax.f32 %v156_v25, 0.0 }
 0x12a   :  { %v160_v28 = vpack.c.bf16 %v159_v27, %v158_v26 }
 0x12c   :  { %279 = vmatmul.msk.bf16.vlgmr.msra.gmra.mxu2 %vm140_vm1, %v160_v28 }
 0x1af   :  { %v209_v30 = vpop.f32.mrf.mxu2 }
 0x1b0   :  { %v210_v31 = vadd.f32 %v299_v29, %v209_v30 }
 0x1b2   :  { %215 = vst.msk [vmem:[#allocation7] sm:$0xff] %vm214_vm2, %v210_v31 }
 0x1b7   :  { %v211_v32 = vpop.f32.mrf.mxu2 }
 0x1b8   :  { %v212_v33 = vadd.f32 %v299_v29, %v211_v32 }
 0x1ba   :  { %216 = vst.msk [vmem:[#allocation7 + $0x8] sm:$0xff] %vm214_vm2, %v212_v33 }
 0x1bb   :  { %229 = dma.vmem_to_hbm [thread:$0]  %s222_s12, 256, %s224_s0, [#allocation4], %s379_s9, %s379_s9, %s380_s10  }
 0x1bc   :  { %376 = dma.done.wait [#allocation4], 256  }
 0x1bd   :  { %377 = vsyncadd [#allocation4], 4294967040 }
 0x1be   :  { %234 = vsyncpa [#allocation3], 1 }
 0x1bf   :  { %235 = vsyncpa [#allocation6], 1 }
 0x1c0   :  { %236 = vsyncpa [#allocation4], 1 }

</bundles_post_ra>
